<compile_context>
chip_gen: v7x
topology: tpu7x:2x2x1
jax: 0.10.0
libtpu: 0.0.40
codegen_flags: <defaults>
</compile_context>

<pallas_src>
import jax
import jax.numpy as jnp
from jax.experimental import pallas as pl
from jax.experimental.pallas import tpu as pltpu


def _mlp_softmax_kernel(x_ref, w1_ref, b1_ref, w2_ref, b2_ref, w3_ref, b3_ref,
                        o_ref):
    x = x_ref[...]                                              # (TB, 8)
    # Linear(8, 128) + ReLU
    h1 = jnp.dot(x, w1_ref[...], preferred_element_type=jnp.float32)
    h1 = jnp.maximum(h1 + b1_ref[...], 0.0)                     # (TB, 128)
    # Linear(128, 128) + ReLU
    h2 = jnp.dot(h1, w2_ref[...], preferred_element_type=jnp.float32)
    h2 = jnp.maximum(h2 + b2_ref[...], 0.0)                     # (TB, 128)
    # Linear(128, 2)
    logits = jnp.dot(h2, w3_ref[...], preferred_element_type=jnp.float32)
    logits = logits + b3_ref[...]                               # (TB, 2)
    # 2-class softmax without cross-lane (XLU) reductions: work on the two
    # columns directly. Numerically stable (subtract the pairwise max).
    l0 = logits[:, 0:1]
    l1 = logits[:, 1:2]
    m = jnp.maximum(l0, l1)
    e0 = jnp.exp(l0 - m)
    e1 = jnp.exp(l1 - m)
    inv = 1.0 / (e0 + e1)
    probs = jnp.concatenate([e0 * inv, e1 * inv], axis=-1)      # (TB, 2)
    o_ref[...] = probs.astype(o_ref.dtype)


def auxiliary_forward(x, params, *, tb_max=1024):
    """x: shape (B, ...) flattening to (B, 8). Returns (B, 2) softmax probs."""
    w1, b1, w2, b2, w3, b3 = params
    B = x.shape[0]
    x2d = jnp.reshape(x, (B, -1)).astype(jnp.float32)           # nn.Flatten()
    assert x2d.shape[1] == 8, "Auxiliary expects 8 flattened features"

    def round_up(v, m):
        return ((v + m - 1) // m) * m

    # Batch tile: multiple of 8 (sublane), capped so intermediates (TB,128)f32
    # stay small; pad B up to a whole number of tiles.
    TB = min(tb_max, round_up(B, 8))
    nb = pl.cdiv(B, TB)
    B_pad = nb * TB
    if B_pad != B:
        x2d = jnp.pad(x2d, ((0, B_pad - B), (0, 0)))

    weight_bytes = 4 * (8 * 128 + 128 + 128 * 128 + 128 + 128 * 2 + 2)
    cost = pl.CostEstimate(
        flops=2 * B_pad * (8 * 128 + 128 * 128 + 128 * 2),
        transcendentals=2 * B_pad,
        bytes_accessed=B_pad * (8 + 2) * 4 + weight_bytes,
    )

    out = pl.pallas_call(
        _mlp_softmax_kernel,
        out_shape=jax.ShapeDtypeStruct((B_pad, 2), jnp.float32),
        grid_spec=pltpu.PrefetchScalarGridSpec(
            num_scalar_prefetch=0,
            grid=(nb,),
            in_specs=[
                pl.BlockSpec((TB, 8), lambda i: (i, 0)),      # x: streamed
                pl.BlockSpec((8, 128), lambda i: (0, 0)),     # W1 (resident)
                pl.BlockSpec((1, 128), lambda i: (0, 0)),     # b1 (resident)
                pl.BlockSpec((128, 128), lambda i: (0, 0)),   # W2 (resident)
                pl.BlockSpec((1, 128), lambda i: (0, 0)),     # b2 (resident)
                pl.BlockSpec((128, 2), lambda i: (0, 0)),     # W3 (resident)
                pl.BlockSpec((1, 2), lambda i: (0, 0)),       # b3 (resident)
            ],
            out_specs=pl.BlockSpec((TB, 2), lambda i: (i, 0)),
        ),
        compiler_params=pltpu.CompilerParams(
            dimension_semantics=("parallel",),      # megacore on v7x
            vmem_limit_bytes=32 * 1024 * 1024,      # explicit, fits v7x too
        ),
        cost_estimate=cost,
    )(x2d, w1, b1, w2, b2, w3, b3)
    return out[:B]


def init_params(key):
    """Deterministic init mimicking nn.Linear (uniform +/- 1/sqrt(fan_in))."""
    ks = jax.random.split(key, 6)

    def linear(kw, kb, fan_in, fan_out):
        bound = 1.0 / (fan_in ** 0.5)
        w = jax.random.uniform(kw, (fan_in, fan_out), jnp.float32, -bound, bound)
        b = jax.random.uniform(kb, (1, fan_out), jnp.float32, -bound, bound)
        return w, b

    w1, b1 = linear(ks[0], ks[1], 8, 128)
    w2, b2 = linear(ks[2], ks[3], 128, 128)
    w3, b3 = linear(ks[4], ks[5], 128, 2)
    return (w1, b1, w2, b2, w3, b3)


def _reference(x, params):
    w1, b1, w2, b2, w3, b3 = params
    x2d = jnp.reshape(x, (x.shape[0], -1)).astype(jnp.float32)
    h1 = jnp.maximum(x2d @ w1 + b1, 0.0)
    h2 = jnp.maximum(h1 @ w2 + b2, 0.0)
    logits = h2 @ w3 + b3
    return jax.nn.softmax(logits, axis=1)


if __name__ == "__main__":
    key = jax.random.PRNGKey(0)
    k_param, k_x1, k_x2 = jax.random.split(key, 3)
    params = init_params(k_param)

    # Small input: batch=2, flattens to 8 features (shape (2, 2, 4)).
    x_small = jax.random.normal(k_x1, (2, 2, 4), jnp.float32)
    out_small = jax.block_until_ready(auxiliary_forward(x_small, params))
    ref_small = _reference(x_small, params)
    assert out_small.shape == (2, 2)
    assert jnp.allclose(out_small, ref_small, atol=1e-5, rtol=1e-5)
    assert jnp.allclose(jnp.sum(out_small, axis=1), 1.0, atol=1e-5)

    # Multi-tile path: B=300 with tb_max=128 -> grid of 3 steps + padded tail.
    x_big = jax.random.normal(k_x2, (300, 8), jnp.float32)
    out_big = jax.block_until_ready(auxiliary_forward(x_big, params, tb_max=128))
    ref_big = _reference(x_big, params)
    assert out_big.shape == (300, 2)
    assert jnp.allclose(out_big, ref_big, atol=1e-5, rtol=1e-5)
    assert jnp.allclose(jnp.sum(out_big, axis=1), 1.0, atol=1e-5)
    assert not jnp.any(jnp.isnan(out_big))

    print("KERNEL_OK")
</pallas_src>

<mosaic_0001>
module attributes {stable_mosaic.version = 11 : i64} {
  func.func @_mlp_softmax_kernel(%arg0: i32, %arg1: memref<8x8xf32, #tpu.memory_space<vmem>>, %arg2: memref<8x128xf32, #tpu.memory_space<vmem>>, %arg3: memref<1x128xf32, #tpu.memory_space<vmem>>, %arg4: memref<128x128xf32, #tpu.memory_space<vmem>>, %arg5: memref<1x128xf32, #tpu.memory_space<vmem>>, %arg6: memref<128x2xf32, #tpu.memory_space<vmem>>, %arg7: memref<1x2xf32, #tpu.memory_space<vmem>>, %arg8: memref<8x2xf32, #tpu.memory_space<vmem>>) attributes {dimension_semantics = [#tpu.dimension_semantics<parallel>], iteration_bounds = array<i64: 1>, scalar_prefetch = 0 : i64, scratch_operands = 0 : i64, tpu.core_type = #tpu.core_type<tc>, window_params = [{transform_indices = @transform_0, window_bounds = array<i64: 8, 8>}, {pipeline_mode = #tpu.pipeline_mode<synchronous>, transform_indices = @transform_1, window_bounds = array<i64: 8, 128>}, {pipeline_mode = #tpu.pipeline_mode<synchronous>, transform_indices = @transform_2, window_bounds = array<i64: 1, 128>}, {pipeline_mode = #tpu.pipeline_mode<synchronous>, transform_indices = @transform_3, window_bounds = array<i64: 128, 128>}, {pipeline_mode = #tpu.pipeline_mode<synchronous>, transform_indices = @transform_4, window_bounds = array<i64: 1, 128>}, {pipeline_mode = #tpu.pipeline_mode<synchronous>, transform_indices = @transform_5, window_bounds = array<i64: 128, 2>}, {pipeline_mode = #tpu.pipeline_mode<synchronous>, transform_indices = @transform_6, window_bounds = array<i64: 1, 2>}, {transform_indices = @transform_7, window_bounds = array<i64: 8, 2>}]} {
    %c0 = arith.constant 0 : index
    %c0_0 = arith.constant 0 : index
    %0 = vector.load %arg1[%c0, %c0_0] : memref<8x8xf32, #tpu.memory_space<vmem>>, vector<8x8xf32>
    %c0_1 = arith.constant 0 : index
    %c0_2 = arith.constant 0 : index
    %1 = vector.load %arg2[%c0_1, %c0_2] : memref<8x128xf32, #tpu.memory_space<vmem>>, vector<8x128xf32>
    %cst = arith.constant dense<0.000000e+00> : vector<8x128xf32>
    %2 = tpu.matmul %0, %1, %cst {dimension_numbers = #tpu.dot_dimension_numbers<[1], [0], [0], [1], [0, 0, 1, 1], [], []>} : vector<8x8xf32>, vector<8x128xf32>, vector<8x128xf32> -> vector<8x128xf32>
    %c0_3 = arith.constant 0 : index
    %c0_4 = arith.constant 0 : index
    %3 = vector.load %arg3[%c0_3, %c0_4] : memref<1x128xf32, #tpu.memory_space<vmem>>, vector<1x128xf32>
    %4 = vector.broadcast %3 : vector<1x128xf32> to vector<8x128xf32>
    %5 = arith.addf %2, %4 : vector<8x128xf32>
    %cst_5 = arith.constant 0.000000e+00 : f32
    %6 = vector.broadcast %cst_5 : f32 to vector<8x128xf32>
    %7 = arith.maximumf %5, %6 : vector<8x128xf32>
    %c0_6 = arith.constant 0 : index
    %c0_7 = arith.constant 0 : index
    %8 = vector.load %arg4[%c0_6, %c0_7] : memref<128x128xf32, #tpu.memory_space<vmem>>, vector<128x128xf32>
    %cst_8 = arith.constant dense<0.000000e+00> : vector<8x128xf32>
    %9 = tpu.matmul %7, %8, %cst_8 {dimension_numbers = #tpu.dot_dimension_numbers<[1], [0], [0], [1], [0, 0, 1, 1], [], []>} : vector<8x128xf32>, vector<128x128xf32>, vector<8x128xf32> -> vector<8x128xf32>
    %c0_9 = arith.constant 0 : index
    %c0_10 = arith.constant 0 : index
    %10 = vector.load %arg5[%c0_9, %c0_10] : memref<1x128xf32, #tpu.memory_space<vmem>>, vector<1x128xf32>
    %11 = vector.broadcast %10 : vector<1x128xf32> to vector<8x128xf32>
    %12 = arith.addf %9, %11 : vector<8x128xf32>
    %cst_11 = arith.constant 0.000000e+00 : f32
    %13 = vector.broadcast %cst_11 : f32 to vector<8x128xf32>
    %14 = arith.maximumf %12, %13 : vector<8x128xf32>
    %c0_12 = arith.constant 0 : index
    %c0_13 = arith.constant 0 : index
    %15 = vector.load %arg6[%c0_12, %c0_13] : memref<128x2xf32, #tpu.memory_space<vmem>>, vector<128x2xf32>
    %cst_14 = arith.constant dense<0.000000e+00> : vector<8x2xf32>
    %16 = tpu.matmul %14, %15, %cst_14 {dimension_numbers = #tpu.dot_dimension_numbers<[1], [0], [0], [1], [0, 0, 1, 1], [], []>} : vector<8x128xf32>, vector<128x2xf32>, vector<8x2xf32> -> vector<8x2xf32>
    %c0_15 = arith.constant 0 : index
    %c0_16 = arith.constant 0 : index
    %17 = vector.load %arg7[%c0_15, %c0_16] : memref<1x2xf32, #tpu.memory_space<vmem>>, vector<1x2xf32>
    %18 = vector.broadcast %17 : vector<1x2xf32> to vector<8x2xf32>
    %19 = arith.addf %16, %18 : vector<8x2xf32>
    %20 = vector.extract_strided_slice %19 {offsets = [0, 0], sizes = [8, 1], strides = [1, 1]} : vector<8x2xf32> to vector<8x1xf32>
    %21 = vector.extract_strided_slice %19 {offsets = [0, 1], sizes = [8, 1], strides = [1, 1]} : vector<8x2xf32> to vector<8x1xf32>
    %22 = arith.maximumf %20, %21 : vector<8x1xf32>
    %23 = arith.subf %20, %22 : vector<8x1xf32>
    %24 = math.exp %23 : vector<8x1xf32>
    %25 = arith.subf %21, %22 : vector<8x1xf32>
    %26 = math.exp %25 : vector<8x1xf32>
    %27 = arith.addf %24, %26 : vector<8x1xf32>
    %cst_17 = arith.constant 1.000000e+00 : f32
    %28 = vector.broadcast %cst_17 : f32 to vector<8x1xf32>
    %29 = arith.divf %28, %27 : vector<8x1xf32>
    %30 = arith.mulf %24, %29 : vector<8x1xf32>
    %31 = arith.mulf %26, %29 : vector<8x1xf32>
    %32 = tpu.concatenate %30, %31 in 1 : vector<8x1xf32>, vector<8x1xf32> -> vector<8x2xf32>
    %c0_18 = arith.constant 0 : index
    %c0_19 = arith.constant 0 : index
    %33 = vector.load %arg8[%c0_18, %c0_19] : memref<8x2xf32, #tpu.memory_space<vmem>>, vector<8x2xf32>
    tpu.vector_store %arg8[%c0_18, %c0_19], %32 {strides = array<i32>} : memref<8x2xf32, #tpu.memory_space<vmem>>, vector<8x2xf32>,
    return
  }
  func.func @transform_0(%arg0: i32) -> (i32, i32) {
    %c0_i32 = arith.constant 0 : i32
    %c0_i32_0 = arith.constant 0 : i32
    return %arg0, %c0_i32 : i32, i32
  }
  func.func @transform_1(%arg0: i32) -> (i32, i32) {
    %c0_i32 = arith.constant 0 : i32
    %c0_i32_0 = arith.constant 0 : i32
    %c0_i32_1 = arith.constant 0 : i32
    return %c0_i32, %c0_i32_0 : i32, i32
  }
  func.func @transform_2(%arg0: i32) -> (i32, i32) {
    %c0_i32 = arith.constant 0 : i32
    %c0_i32_0 = arith.constant 0 : i32
    %c0_i32_1 = arith.constant 0 : i32
    return %c0_i32, %c0_i32_0 : i32, i32
  }
  func.func @transform_3(%arg0: i32) -> (i32, i32) {
    %c0_i32 = arith.constant 0 : i32
    %c0_i32_0 = arith.constant 0 : i32
    %c0_i32_1 = arith.constant 0 : i32
    return %c0_i32, %c0_i32_0 : i32, i32
  }
  func.func @transform_4(%arg0: i32) -> (i32, i32) {
    %c0_i32 = arith.constant 0 : i32
    %c0_i32_0 = arith.constant 0 : i32
    %c0_i32_1 = arith.constant 0 : i32
    return %c0_i32, %c0_i32_0 : i32, i32
  }
  func.func @transform_5(%arg0: i32) -> (i32, i32) {
    %c0_i32 = arith.constant 0 : i32
    %c0_i32_0 = arith.constant 0 : i32
    %c0_i32_1 = arith.constant 0 : i32
    return %c0_i32, %c0_i32_0 : i32, i32
  }
  func.func @transform_6(%arg0: i32) -> (i32, i32) {
    %c0_i32 = arith.constant 0 : i32
    %c0_i32_0 = arith.constant 0 : i32
    %c0_i32_1 = arith.constant 0 : i32
    return %c0_i32, %c0_i32_0 : i32, i32
  }
  func.func @transform_7(%arg0: i32) -> (i32, i32) {
    %c0_i32 = arith.constant 0 : i32
    %c0_i32_0 = arith.constant 0 : i32
    return %arg0, %c0_i32 : i32, i32
  }
}

</mosaic_0001>

<bundles_post_ra>
// kernel: tpu_custom_call.1
= control target key start
LH: loop header
LB: loop body
LE: loop exit
PB: predicated region body
PF: predicated region fallthrough
CT: control target
= control target key end

     0   :  { %12 = vsyncpa [#allocation3], 0  ;;  %s545_s24 = smov [#allocation2]   ;;  %s733_s0 = inlined_call_operand.vmem [shape: f32[8,8], index: 0, kind: input, shape index: {}]   ;;  %s734_s1 = inlined_call_operand.hbm [shape: f32[8,128], index: 1, kind: input, shape index: {}]   ;;  %s735_s2 = inlined_call_operand.vmem [shape: f32[1,128], index: 2, kind: input, shape index: {}]   ;;  %s736_s3 = inlined_call_operand.vmem [shape: f32[128,128], index: 3, kind: input, shape index: {}]   ;;  %s737_s4 = inlined_call_operand.vmem [shape: f32[1,128], index: 4, kind: input, shape index: {}]   ;;  %s738_s5 = inlined_call_operand.vmem [shape: f32[128,2], index: 5, kind: input, shape index: {}]   ;;  %s739_s6 = inlined_call_operand.vmem [shape: f32[1,2], index: 6, kind: input, shape index: {}]   ;;  %s740_s7 = inlined_call_operand.vmem [shape: f32[8,2], index: 7, kind: output, shape index: {}]  }
   0x1   :  { %s21_s25 = sshll.u32 %s545_s24, 4  ;;  %s521_s28 = scalar_lea.hbm %s734_s1, 128  ;;  %s22_s25 = int_to_ptr.vmem [resolvable:$true] %s21_s25 }
   0x2   :  { %p522_p0 = scmp.ne.s32.totalorder %s734_s1, %s521_s28  ;;  %p525_p1 = scmp.lt.u32.totalorder %s521_s28, %s734_s1 }
   0x4   :  { %p527_p2 = pnand %p525_p1, %p522_p0 }
   0x6   :  { %530 = shalt.err (!%p527_p2)
}
   0x7   :  { %s531_s10 = scalar_lea.vmem %s22_s25, 128  ;;  %p536_p4 = scmp.lt.s32.totalorder %s22_s25, %s22_s25 }
   0x8   :  { %p532_p3 = scmp.ne.s32.totalorder %s22_s25, %s531_s10  ;;  %p537_p5 = scmp.lt.s32.totalorder %s531_s10, %s531_s10 }
   0xa   :  { %p538_p6 = por %p537_p5, %p536_p4 }
   0xc   :  { %p539_p7 = pnand %p538_p6, %p532_p3 }
   0xe   :  { %542 = shalt.err (!%p539_p7)
}
   0xf   :  { %24 = dma.hbm_to_vmem [thread:$0]  %s734_s1, 128, %s22_s25, [#allocation3]  }
  0x10   :  { %543 = dma.done.wait [#allocation3], 128  }
  0x11   :  { %544 = vsyncadd [#allocation3], 4294967168  ;;  %v546_v0 = vmov 0.0   ;;  %vm547_vm0 = vmmov 0   ;;  %v548_v1 = vmov 0.0|0.0   ;;  %vm47_vm1 = vcmask 64512  }
  0x12   :  { %386 = vmatprep.subr.mxu0 %v546_v0  ;;  %388 = vmatprep.mubr.msk.f32.mxu0 %vm547_vm0, %v546_v0  ;;  %v39_v2 = vld [vmem:[#allocation2] sm:$0xff]  ;;  %v123_v5 = vld [vmem:[%s736_s3 + $0x8] sm:$0xff]  ;;  %v124_v6 = vld [vmem:[%s736_s3 + $0x10] sm:$0xff]  ;;  %s549_s30 = smov 127   ;;  %vm337_vm2 = vcmask 7168   ;;  %vm339_vm3 = vcmask 15360  }
  0x13   :  { %461 = vmatprep.subr.bf16.mxu1 %v548_v1  ;;  %423 = vmatprep.mubr.msk.f32.mxu1 %vm547_vm0, %v546_v0  ;;  %v38_v3 = vld [vmem:[%s733_s0] sm:$0xff]  ;;  %v125_v7 = vld [vmem:[%s736_s3 + $0x18] sm:$0xff]  ;;  %v127_v11 = vld [vmem:[%s736_s3 + $0x28] sm:$0xff] }
  0x14   :  { %v122_v4 = vld [vmem:[%s736_s3] sm:$0xff]  ;;  %387 = vmatpush3.msra.mxu0 %v39_v2  ;;  %v465_v9 = vpack.c.bf16 %v125_v7, %v124_v6  ;;  %v128_v13 = vld [vmem:[%s736_s3 + $0x30] sm:$0xff]  ;;  %v129_v14 = vld [vmem:[%s736_s3 + $0x38] sm:$0xff] }
  0x15   :  { %389 = vmatmul.mubr.msk.f32.vlgmr.msra.gmra.mrb[0].mxu0 %vm47_vm1, %v38_v3  ;;  %v462_v8 = vpack.c.bf16 %v123_v5, %v122_v4  ;;  %485 = vmatprep.subr.bf16.mxu0 %v548_v1  ;;  %v126_v10 = vld [vmem:[%s736_s3 + $0x20] sm:$0xff]  ;;  %v471_v15 = vpack.c.bf16 %v129_v14, %v128_v13  ;;  %v131_v17 = vld [vmem:[%s736_s3 + $0x48] sm:$0xff]  ;;  %v132_v19 = vld [vmem:[%s736_s3 + $0x50] sm:$0xff] }
  0x16   :  { %458 = vmatprep.mubr.msk.f32.mxu0 %vm547_vm0, %v546_v0  ;;  %v468_v12 = vpack.c.bf16 %v127_v11, %v126_v10  ;;  %v130_v16 = vld [vmem:[%s736_s3 + $0x40] sm:$0xff]  ;;  %v133_v20 = vld [vmem:[%s736_s3 + $0x58] sm:$0xff]  ;;  %v135_v23 = vld [vmem:[%s736_s3 + $0x68] sm:$0xff] }
  0x17   :  { %463 = vmatpush3.bf16.msra.mxu1 %v462_v8  ;;  %v474_v18 = vpack.c.bf16 %v131_v17, %v130_v16  ;;  %v477_v21 = vpack.c.bf16 %v133_v20, %v132_v19  ;;  %v134_v22 = vld [vmem:[%s736_s3 + $0x60] sm:$0xff]  ;;  %v136_v25 = vld [vmem:[%s736_s3 + $0x70] sm:$0xff]  ;;  %v137_v26 = vld [vmem:[%s736_s3 + $0x78] sm:$0xff] }
  0x18   :  { %464 = vmatprep.subr.bf16.mxu1 %v548_v1  ;;  %v480_v24 = vpack.c.bf16 %v135_v23, %v134_v22  ;;  %v483_v27 = vpack.c.bf16 %v137_v26, %v136_v25  ;;  %v216_v28 = vld [vmem:[%s738_s5] sm:$0xff]  ;;  %v217_v29 = vld [vmem:[%s738_s5 + $0x8] sm:$0xff]  ;;  %v218_v30 = vld [vmem:[%s738_s5 + $0x10] sm:$0xff] }
  0x19   :  { %v486_v31 = vpack.c.bf16 %v217_v29, %v216_v28  ;;  %v219_v32 = vld [vmem:[%s738_s5 + $0x18] sm:$0xff]  ;;  %v220_v34 = vld [vmem:[%s738_s5 + $0x20] sm:$0xff]  ;;  %v221_v35 = vld [vmem:[%s738_s5 + $0x28] sm:$0xff] }
  0x1a   :  { %v489_v33 = vpack.c.bf16 %v219_v32, %v218_v30  ;;  %v492_v36 = vpack.c.bf16 %v221_v35, %v220_v34  ;;  %v222_v37 = vld [vmem:[%s738_s5 + $0x30] sm:$0xff]  ;;  %v223_v38 = vld [vmem:[%s738_s5 + $0x38] sm:$0xff]  ;;  %v224_v40 = vld [vmem:[%s738_s5 + $0x40] sm:$0xff] }
  0x1b   :  { %466 = vmatpush3.bf16.msra.mxu1 %v465_v9  ;;  %487 = vmatpush3.bf16.msra.mxu0 %v486_v31  ;;  %v495_v39 = vpack.c.bf16 %v223_v38, %v222_v37  ;;  %v225_v41 = vld [vmem:[%s738_s5 + $0x48] sm:$0xff]  ;;  %v226_v43 = vld [vmem:[%s738_s5 + $0x50] sm:$0xff]  ;;  %v227_v44 = vld [vmem:[%s738_s5 + $0x58] sm:$0xff] }
  0x1c   :  { %467 = vmatprep.subr.bf16.mxu1 %v548_v1  ;;  %488 = vmatprep.subr.bf16.mxu0 %v548_v1  ;;  %v498_v42 = vpack.c.bf16 %v225_v41, %v224_v40  ;;  %v501_v45 = vpack.c.bf16 %v227_v44, %v226_v43  ;;  %v228_v46 = vld [vmem:[%s738_s5 + $0x60] sm:$0xff]  ;;  %v229_v47 = vld [vmem:[%s738_s5 + $0x68] sm:$0xff]  ;;  %v230_v54 = vld [vmem:[%s738_s5 + $0x70] sm:$0xff] }
  0x1d   :  { %v504_v48 = vpack.c.bf16 %v229_v47, %v228_v46  ;;  %v346_v49 = vld [vmem:[%s735_s2] ss:$0 sm:$0xff]  ;;  %v231_v55 = vld [vmem:[%s738_s5 + $0x78] sm:$0xff]  ;;  %s550_s5 = smov 1  }
  0x1e   :  { %v507_v56 = vpack.c.bf16 %v231_v55, %v230_v54  ;;  %v348_v57 = vld [vmem:[%s737_s4] ss:$0 sm:$0xff] }
  0x1f   :  { %469 = vmatpush3.bf16.msra.mxu1 %v468_v12  ;;  %490 = vmatpush3.bf16.msra.mxu0 %v489_v33  ;;  %v349_v62 = vld [vmem:[%s739_s6] ss:$0 sm:$0xff] }
  0x20   :  { %470 = vmatprep.subr.bf16.mxu1 %v548_v1  ;;  %491 = vmatprep.subr.bf16.mxu0 %v548_v1 }
  0x23   :  { %472 = vmatpush3.bf16.msra.mxu1 %v471_v15  ;;  %493 = vmatpush3.bf16.msra.mxu0 %v492_v36 }
  0x24   :  { %473 = vmatprep.subr.bf16.mxu1 %v548_v1  ;;  %494 = vmatprep.subr.bf16.mxu0 %v548_v1 }
  0x27   :  { %475 = vmatpush3.bf16.msra.mxu1 %v474_v18  ;;  %496 = vmatpush3.bf16.msra.mxu0 %v495_v39 }
  0x28   :  { %476 = vmatprep.subr.bf16.mxu1 %v548_v1  ;;  %497 = vmatprep.subr.bf16.mxu0 %v548_v1 }
  0x2b   :  { %478 = vmatpush3.bf16.msra.mxu1 %v477_v21  ;;  %499 = vmatpush3.bf16.msra.mxu0 %v498_v42 }
  0x2c   :  { %479 = vmatprep.subr.bf16.mxu1 %v548_v1  ;;  %500 = vmatprep.subr.bf16.mxu0 %v548_v1 }
  0x2f   :  { %481 = vmatpush3.bf16.msra.mxu1 %v480_v24  ;;  %502 = vmatpush3.bf16.msra.mxu0 %v501_v45 }
  0x30   :  { %482 = vmatprep.subr.bf16.mxu1 %v548_v1  ;;  %503 = vmatprep.subr.bf16.mxu0 %v548_v1 }
  0x33   :  { %484 = vmatpush3.bf16.msra.mxu1 %v483_v27  ;;  %505 = vmatpush3.bf16.msra.mxu0 %v504_v48 }
  0x34   :  { %506 = vmatprep.subr.bf16.mxu0 %v548_v1 }
  0x37   :  { %508 = vmatpush3.bf16.msra.mxu0 %v507_v56 }
  0xe8   :  { %v117_v50 = vpop.f32.mrb[0].mxu0 }
  0xe9   :  { %v118_v51 = vadd.f32 %v346_v49, %v117_v50  ;;  %v390_v52 = vpop.f32.mrb[1].mxu0 }
  0xeb   :  { %v121_v53 = vmax.f32 %v118_v51, 0.0 }
  0xed   :  { %424 = vmatmul.mubr.f32.vlgmr.msra.gmra.mrb[0].mxu1 %v121_v53 }
 0x1c0   :  { %v211_v58 = vpop.f32.mrb[0].mxu1 }
 0x1c1   :  { %v212_v59 = vadd.f32 %v348_v57, %v211_v58  ;;  %v425_v60 = vpop.f32.mrb[1].mxu1 }
 0x1c3   :  { %v215_v61 = vmax.f32 %v212_v59, 0.0 }
 0x1c5   :  { %459 = vmatmul.mubr.f32.vlgmr.msra.gmra.mrb[2].mxu0 %v215_v61 }
 0x298   :  { %v305_v63 = vpop.f32.mrb[2].mxu0 }
 0x299   :  { %v306_v0 = vadd.f32 %v349_v62, %v305_v63  ;;  %v460_v1 = vpop.f32.mrb[3].mxu0 }
 0x29b   :  { %310 = vrot.lane.b32.xlu0 %v306_v0, %s549_s30 }
 0x30d   :  { %v311_v2 = vpop.permute.xlu0 %310 }
 0x30e   :  { %v313_v3 = vmax.f32 %v306_v0, %v311_v2 }
 0x310   :  { %318 = vrot.lane.b32.xlu0 %v313_v3, %s550_s5  ;;  %v314_v8 = vsub.f32 %v306_v0, %v313_v3 }
 0x312   :  { %v315_v9 = vmul.f32 1.442695, %v314_v8 }
 0x382   :  { %v319_v4 = vpop.permute.xlu0 %318 }
 0x383   :  { %v321_v5 = vsub.f32 %v306_v0, %v319_v4 }
 0x385   :  { %v322_v6 = vmul.f32 1.442695, %v321_v5 }
 0x387   :  { %515 = vpow2.f32 %v322_v6 }
 0x388   :  { %517 = vpow2.f32 %v315_v9 }
 0x391   :  { %v516_v7 = vpop.eup %515 }
 0x392   :  { %325 = vrot.lane.b32.xlu1 %v516_v7, %s549_s30  ;;  %v518_v10 = vpop.eup %517 }
 0x404   :  { %v326_v11 = vpop.permute.xlu1 %325 }
 0x405   :  { %v328_v12 = vadd.f32 %v518_v10, %v326_v11 }
 0x407   :  { %519 = vrcp.f32 %v328_v12 }
 0x411   :  { %v520_v13 = vpop.eup %519 }
 0x412   :  { %333 = vrot.lane.b32.xlu1 %v520_v13, %s550_s5  ;;  %v331_v14 = vmul.f32 %v520_v13, %v518_v10 }
 0x484   :  { %v334_v15 = vpop.permute.xlu1 %333 }
 0x485   :  { %v336_v16 = vmul.f32 %v516_v7, %v334_v15 }
 0x487   :  { %v338_v17 = vsel %vm337_vm2, %v331_v14, %v336_v16 }
 0x488   :  { %340 = vst.msk [vmem:[%s740_s7] sm:$0xff] %vm339_vm3, %v338_v17 }
 0x489   :  { %345 = vsyncpa [#allocation3], 1 }

</bundles_post_ra>
